<compile_context>
chip_gen: v7x
topology: tpu7x:2x2x1
jax: 0.10.0
libtpu: 0.0.40
codegen_flags: <defaults>
</compile_context>

<pallas_src>
import math
import numpy as np
import jax
import jax.numpy as jnp
from jax.experimental import pallas as pl
from jax.experimental.pallas import tpu as pltpu


def _round_up(x, m):
    return ((x + m - 1) // m) * m


# ---------------------------------------------------------------------------
# Kernel 1: per-edge messages (edges pre-sorted by relation, one relation per tile)
#   hsrc already carries edge_norm * pad_mask, weight is block-diagonal per relation.
# ---------------------------------------------------------------------------
def rgcn_msg_kernel(tile_rel_ref,   # SMEM (num_e_tiles,) relation id per edge tile
                    hsrc_ref,       # (TE, in_feat)        bf16  (h[src] * edge_norm)
                    w_ref,          # (in_feat, out_pad)   bf16  block-diag weight of this rel
                    msg_ref):       # (TE, out_pad)        bf16
    del tile_rel_ref
    msg_ref[...] = jnp.dot(hsrc_ref[...], w_ref[...],
                           preferred_element_type=jnp.float32).astype(msg_ref.dtype)


# ---------------------------------------------------------------------------
# Kernel 2: segment-sum over dst-grouped messages + node_norm / bias / self-loop / relu
#   grid = (num_node_tiles, max_edge_tiles_per_node_tile); per-node-tile edge-tile
#   offsets/counts are scalar-prefetched so each node tile only visits its own edges.
# ---------------------------------------------------------------------------
def rgcn_agg_kernel(off_ref,        # SMEM (num_n_tiles,)  first edge tile of node tile i
                    cnt_ref,        # SMEM (num_n_tiles,)  number of edge tiles of node tile i
                    dst_ref,        # (1, TE)   int32  dst index local to node tile, -1 = pad
                    msg_ref,        # (TE, out_pad)    bf16
                    nnorm_ref,      # (TN, 1)          f32
                    bias_ref,       # (1, out_pad)     f32
                    h_ref,          # (TN, in_feat)    bf16
                    loopw_ref,      # (in_feat, out_pad) bf16
                    out_ref,        # (TN, out_pad)    f32
                    acc_ref,        # (TN, out_pad)    f32 scratch (message sum)
                    loop_ref):      # (TN, out_pad)    f32 scratch (self-loop message)
    i = pl.program_id(0)
    j = pl.program_id(1)
    tn = acc_ref.shape[0]
    te = msg_ref.shape[0]

    @pl.when(j == 0)
    def _init():
        acc_ref[...] = jnp.zeros_like(acc_ref)
        # self-loop matmul issued early so it overlaps the aggregation loop
        loop_ref[...] = jnp.dot(h_ref[...], loopw_ref[...],
                                preferred_element_type=jnp.float32)

    # only accumulate the edge tiles that belong to this node tile (ragged grid)
    @pl.when(j < cnt_ref[i])
    def _accum():
        rows = jax.lax.broadcasted_iota(jnp.int32, (tn, te), 0)
        one_hot = (rows == dst_ref[...]).astype(jnp.bfloat16)     # exact 0/1
        acc_ref[...] += jnp.dot(one_hot, msg_ref[...],
                                preferred_element_type=jnp.float32)

    @pl.when(j == pl.num_programs(1) - 1)
    def _finalize():
        node = acc_ref[...] * nnorm_ref[...] + bias_ref[...] + loop_ref[...]
        out_ref[...] = jnp.maximum(node, 0.0)


# ---------------------------------------------------------------------------
# Host-side, graph-structure-only preprocessing.
# For a static graph this can be computed once and cached across forward calls.
# ---------------------------------------------------------------------------
def _preprocess_graph(src_np, dst_np, etype_np, num_rels, N_pad, tn, et1, et2):
    E = int(src_np.shape[0])
    num_n_tiles = N_pad // tn

    # --- relation-sorted layout (kernel 1: one relation per edge tile) -------
    rel_pos = np.zeros(max(E, 1), dtype=np.int64)   # original edge id -> row in rel layout
    if E > 0:
        order = np.argsort(etype_np, kind="stable")
        counts = np.bincount(etype_np, minlength=num_rels)
        perm_chunks, valid_chunks, tile_rel = [], [], []
        row = 0
        off = 0
        for r in range(num_rels):
            c = int(counts[r])
            if c:
                pc = _round_up(c, et1)
                idx = np.zeros(pc, np.int64)
                idx[:c] = order[off:off + c]
                val = np.zeros(pc, np.float32)
                val[:c] = 1.0
                rel_pos[order[off:off + c]] = row + np.arange(c)
                perm_chunks.append(idx)
                valid_chunks.append(val)
                tile_rel.extend([r] * (pc // et1))
                row += pc
            off += c
        edge_perm_rel = np.concatenate(perm_chunks)
        edge_valid_rel = np.concatenate(valid_chunks)[:, None]
        tile_rel = np.asarray(tile_rel, np.int32)
    else:
        edge_perm_rel = np.zeros(et1, np.int64)
        edge_valid_rel = np.zeros((et1, 1), np.float32)
        tile_rel = np.zeros(1, np.int32)

    # --- dst-grouped layout (kernel 2: each edge tile hits exactly one node tile)
    ntile_of_edge = (dst_np // tn) if E > 0 else np.zeros(0, np.int64)
    order_dst = np.argsort(ntile_of_edge, kind="stable")
    counts_nt = np.bincount(ntile_of_edge, minlength=num_n_tiles)
    gather_chunks, dstloc_chunks = [], []
    nt_off, nt_cnt = [], []
    tiles_so_far = 0
    ptr = 0
    for i in range(num_n_tiles):
        c = int(counts_nt[i])
        pc = max(_round_up(c, et2), et2)           # every node tile owns >= 1 edge tile
        eids = order_dst[ptr:ptr + c]
        g = np.zeros(pc, np.int64)                 # pad rows point at row 0; masked by dst=-1
        if c:
            g[:c] = rel_pos[eids]
        dl = np.full(pc, -1, np.int32)
        if c:
            dl[:c] = dst_np[eids] - i * tn
        gather_chunks.append(g)
        dstloc_chunks.append(dl)
        nt_off.append(tiles_so_far)
        nt_cnt.append(pc // et2)
        tiles_so_far += pc // et2
        ptr += c

    gather_idx = np.concatenate(gather_chunks)
    dst_local = np.concatenate(dstloc_chunks).reshape(tiles_so_far, 1, et2)
    nt_off = np.asarray(nt_off, np.int32)
    nt_cnt = np.asarray(nt_cnt, np.int32)
    return edge_perm_rel, edge_valid_rel, tile_rel, gather_idx, dst_local, nt_off, nt_cnt


# ---------------------------------------------------------------------------
# Wrapper
# ---------------------------------------------------------------------------
def rgcn_layer_forward(params, h, src, dst, etype, edge_norm, node_norm, time,
                       *, node_tile=256, edge_tile_msg=512, edge_tile_agg=512):
    """Runs the RGCNLayer forward pass.  Returns (node_repr, time_embedding)."""
    N, in_feat = h.shape
    num_rels = params["weight"].shape[0]
    B = params["num_bases"]
    out_feat = params["loop_weight"].shape[1]
    si, so = in_feat // B, out_feat // B
    assert in_feat % B == 0 and out_feat % B == 0
    assert edge_tile_msg % 128 == 0 and edge_tile_agg % 128 == 0

    out_pad = _round_up(out_feat, 128)             # lane-dense msg / out / acc layout

    # node tiling (prefer >=2 tiles so v7x's 2 TensorCores both get work)
    tn = min(node_tile, _round_up(N, 8))
    if N > 8 and _round_up(N, tn) // tn < 2:
        tn = _round_up((N + 1) // 2, 8)
    N_pad = _round_up(N, tn)
    num_n_tiles = N_pad // tn

    src_np = np.asarray(src)
    dst_np = np.asarray(dst)
    etype_np = np.asarray(etype)

    (edge_perm_rel, edge_valid_rel, tile_rel, gather_idx, dst_local,
     nt_off, nt_cnt) = _preprocess_graph(src_np, dst_np, etype_np, num_rels,
                                         N_pad, tn, edge_tile_msg, edge_tile_agg)
    E_rel_pad = int(edge_perm_rel.shape[0])
    num_e_tiles_rel = E_rel_pad // edge_tile_msg
    E_dst_pad = int(gather_idx.shape[0])
    max_etiles = int(nt_cnt.max())

    # ---- operand prep (bf16 at MXU inputs, f32 elsewhere) --------------------
    # edge_norm and the pad mask are folded into the gathered source features so
    # kernel 1 is a single dense matmul per tile:  (h*norm) @ W == (h @ W) * norm.
    if src_np.size:
        hsrc = jnp.take(h, jnp.asarray(src_np[edge_perm_rel]), axis=0)
        enorm = jnp.take(edge_norm, jnp.asarray(edge_perm_rel), axis=0)
        hsrc_scaled = (hsrc * enorm * jnp.asarray(edge_valid_rel)).astype(jnp.bfloat16)
    else:
        hsrc_scaled = jnp.zeros((E_rel_pad, in_feat), jnp.bfloat16)

    # block-diagonal per-relation weight, zero-padded to 128 output lanes
    w = np.asarray(params["weight"], np.float32).reshape(num_rels, B, si, so)
    w_bd = np.zeros((num_rels, in_feat, out_pad), np.float32)
    for b in range(B):
        w_bd[:, b * si:(b + 1) * si, b * so:(b + 1) * so] = w[:, b]
    weight_bd = jnp.asarray(w_bd, jnp.bfloat16)

    h_pad = jnp.zeros((N_pad, in_feat), jnp.float32).at[:N].set(h).astype(jnp.bfloat16)
    nnorm_pad = jnp.zeros((N_pad, 1), jnp.float32).at[:N].set(node_norm)
    bias2d = jnp.zeros((1, out_pad), jnp.float32).at[0, :out_feat].set(params["h_bias"])
    loopw_pad = (jnp.zeros((in_feat, out_pad), jnp.float32)
                 .at[:, :out_feat].set(params["loop_weight"]).astype(jnp.bfloat16))

    vmem_limit = 32 * 1024 * 1024   # per-step footprint is ~1-2 MiB on every generation

    # ---- kernel 1: per-relation messages -------------------------------------
    msg = pl.pallas_call(
        rgcn_msg_kernel,
        out_shape=jax.ShapeDtypeStruct((E_rel_pad, out_pad), jnp.bfloat16),
        grid_spec=pltpu.PrefetchScalarGridSpec(
            num_scalar_prefetch=1,
            grid=(num_e_tiles_rel,),
            in_specs=[
                pl.BlockSpec((edge_tile_msg, in_feat), lambda j, rel: (j, 0)),
                pl.BlockSpec((None, in_feat, out_pad), lambda j, rel: (rel[j], 0, 0)),
            ],
            out_specs=pl.BlockSpec((edge_tile_msg, out_pad), lambda j, rel: (j, 0)),
        ),
        compiler_params=pltpu.CompilerParams(
            dimension_semantics=("parallel",),
            vmem_limit_bytes=vmem_limit),
        cost_estimate=pl.CostEstimate(
            flops=2 * E_rel_pad * in_feat * out_pad,
            transcendentals=0,
            bytes_accessed=(E_rel_pad * in_feat * 2
                            + num_rels * in_feat * out_pad * 2
                            + E_rel_pad * out_pad * 2)),
    )(jnp.asarray(tile_rel), hsrc_scaled, weight_bd)

    # reorder messages into the dst-grouped layout (cheap O(E*out_feat) gather)
    msg_dst = jnp.take(msg, jnp.asarray(gather_idx), axis=0)        # (E_dst_pad, out_pad)
    dst_local_j = jnp.asarray(dst_local)                            # (tiles, 1, et2) int32

    # ---- kernel 2: segment-sum aggregation + epilogue ------------------------
    node_repr = pl.pallas_call(
        rgcn_agg_kernel,
        out_shape=jax.ShapeDtypeStruct((N_pad, out_pad), jnp.float32),
        grid_spec=pltpu.PrefetchScalarGridSpec(
            num_scalar_prefetch=2,
            grid=(num_n_tiles, max_etiles),
            in_specs=[
                pl.BlockSpec((None, 1, edge_tile_agg),
                             lambda i, j, off, cnt:
                             (off[i] + jnp.minimum(j, cnt[i] - 1), 0, 0)),   # dst local idx
                pl.BlockSpec((edge_tile_agg, out_pad),
                             lambda i, j, off, cnt:
                             (off[i] + jnp.minimum(j, cnt[i] - 1), 0)),      # messages
                pl.BlockSpec((tn, 1), lambda i, j, off, cnt: (i, 0)),        # node norm
                pl.BlockSpec((1, out_pad), lambda i, j, off, cnt: (0, 0)),   # bias
                pl.BlockSpec((tn, in_feat), lambda i, j, off, cnt: (i, 0)),  # h
                pl.BlockSpec((in_feat, out_pad), lambda i, j, off, cnt: (0, 0)),  # loop W
            ],
            out_specs=pl.BlockSpec((tn, out_pad), lambda i, j, off, cnt: (i, 0)),
            scratch_shapes=[pltpu.VMEM((tn, out_pad), jnp.float32),
                            pltpu.VMEM((tn, out_pad), jnp.float32)],
        ),
        compiler_params=pltpu.CompilerParams(
            dimension_semantics=("parallel", "arbitrary"),
            vmem_limit_bytes=vmem_limit),
        cost_estimate=pl.CostEstimate(
            flops=2 * E_dst_pad * tn * out_pad + 2 * N_pad * in_feat * out_pad,
            transcendentals=0,
            bytes_accessed=(E_dst_pad * (out_pad * 2 + 4)
                            + N_pad * (in_feat * 2 + out_pad * 4 + 4)
                            + in_feat * out_pad * 2 + out_pad * 4)),
    )(jnp.asarray(nt_off), jnp.asarray(nt_cnt),
      dst_local_j, msg_dst, nnorm_pad, bias2d, h_pad, loopw_pad)

    node_repr = node_repr[:N, :out_feat]
    time_embedding = params["time_embed"][time]
    return node_repr, time_embedding


# ---------------------------------------------------------------------------
# Plain-JAX f32 reference (mirrors the PyTorch forward) for a correctness check
# ---------------------------------------------------------------------------
def rgcn_reference(params, h, src, dst, etype, edge_norm, node_norm, time):
    N, in_feat = h.shape
    E = src.shape[0]
    B = params["num_bases"]
    out_feat = params["loop_weight"].shape[1]
    si, so = in_feat // B, out_feat // B

    loop_message = h @ params["loop_weight"]
    w = jnp.take(params["weight"], etype, axis=0).reshape(E * B, si, so)
    node = jnp.take(h, src, axis=0).reshape(E * B, 1, si)
    msg = jnp.matmul(node, w).reshape(E, out_feat) * edge_norm
    agg = jnp.zeros((N, out_feat), jnp.float32).at[dst].add(msg)
    node_repr = agg * node_norm
    node_repr = node_repr + params["h_bias"]
    node_repr = node_repr + loop_message
    node_repr = jax.nn.relu(node_repr)
    return node_repr, params["time_embed"][time]


# ---------------------------------------------------------------------------
# Deterministic parameter init (xavier_uniform, gain = calculate_gain('relu'))
# ---------------------------------------------------------------------------
def xavier_uniform(key, shape, gain):
    fan_out, fan_in = shape[0], shape[1]
    bound = gain * math.sqrt(6.0 / (fan_in + fan_out))
    return jax.random.uniform(key, shape, jnp.float32, -bound, bound)


if __name__ == "__main__":
    # Small shapes consistent with the module
    N, E = 8, 16                 # nodes, edges
    in_feat, out_feat = 32, 32
    num_rels, num_bases = 3, 4
    num_times = 10
    gain = math.sqrt(2.0)        # nn.init.calculate_gain('relu')

    key = jax.random.PRNGKey(0)
    k = jax.random.split(key, 10)

    params = {
        "num_bases": num_bases,
        "time_embed": xavier_uniform(k[0], (num_times, in_feat), gain),
        "weight": xavier_uniform(
            k[1], (num_rels, num_bases * (in_feat // num_bases) * (out_feat // num_bases)), gain),
        "h_bias": jnp.zeros((out_feat,), jnp.float32),
        "loop_weight": xavier_uniform(k[2], (in_feat, out_feat), gain),
    }

    # Synthetic graph + node features
    h = jax.random.normal(k[3], (N, in_feat), jnp.float32)
    src = jax.random.randint(k[4], (E,), 0, N)
    dst = jax.random.randint(k[5], (E,), 0, N)
    etype = jax.random.randint(k[6], (E,), 0, num_rels)
    edge_norm = jax.random.uniform(k[7], (E, 1), jnp.float32, 0.1, 1.0)
    node_norm = jax.random.uniform(k[8], (N, 1), jnp.float32, 0.1, 1.0)
    time = jnp.array(3, dtype=jnp.int32)

    node_repr, time_emb = rgcn_layer_forward(
        params, h, src, dst, etype, edge_norm, node_norm, time)
    jax.block_until_ready((node_repr, time_emb))

    ref_repr, ref_temb = rgcn_reference(
        params, h, src, dst, etype, edge_norm, node_norm, time)
    assert node_repr.shape == (N, out_feat)
    assert time_emb.shape == (in_feat,)
    # bf16 MXU inputs with f32 accumulation -> ~1e-2 relative error vs f32 reference
    assert jnp.allclose(node_repr, ref_repr, rtol=2e-2, atol=2e-2)
    assert jnp.allclose(time_emb, ref_temb)

    print("KERNEL_OK")
</pallas_src>

<mosaic_0001>
module attributes {stable_mosaic.version = 11 : i64} {
  func.func @rgcn_msg_kernel(%arg0: i32, %arg1: memref<3xi32, #tpu.memory_space<smem>>, %arg2: memref<512x32xbf16, #tpu.memory_space<vmem>>, %arg3: memref<1x32x128xbf16, #tpu.memory_space<vmem>>, %arg4: memref<512x128xbf16, #tpu.memory_space<vmem>>) attributes {dimension_semantics = [#tpu.dimension_semantics<parallel>], iteration_bounds = array<i64: 3>, scalar_prefetch = 1 : i64, scratch_operands = 0 : i64, tpu.core_type = #tpu.core_type<tc>, window_params = [{transform_indices = @transform_0, window_bounds = array<i64: 512, 32>}, {transform_indices = @transform_1, window_bounds = array<i64: 1, 32, 128>}, {transform_indices = @transform_2, window_bounds = array<i64: 512, 128>}]} {
    %c0 = arith.constant 0 : index
    %c0_0 = arith.constant 0 : index
    %0 = vector.load %arg2[%c0, %c0_0] : memref<512x32xbf16, #tpu.memory_space<vmem>>, vector<512x32xbf16>
    %c0_1 = arith.constant 0 : index
    %c0_2 = arith.constant 0 : index
    %c0_3 = arith.constant 0 : index
    %1 = vector.load %arg3[%c0_1, %c0_2, %c0_3] : memref<1x32x128xbf16, #tpu.memory_space<vmem>>, vector<1x32x128xbf16>
    %2 = vector.shape_cast %1 : vector<1x32x128xbf16> to vector<32x128xbf16>
    %cst = arith.constant dense<0.000000e+00> : vector<512x128xf32>
    %3 = tpu.matmul %0, %2, %cst {dimension_numbers = #tpu.dot_dimension_numbers<[1], [0], [0], [1], [0, 0, 1, 1], [], []>} : vector<512x32xbf16>, vector<32x128xbf16>, vector<512x128xf32> -> vector<512x128xf32>
    %4 = arith.truncf %3 : vector<512x128xf32> to vector<512x128xbf16>
    %c0_4 = arith.constant 0 : index
    %c0_5 = arith.constant 0 : index
    %5 = vector.load %arg4[%c0_4, %c0_5] : memref<512x128xbf16, #tpu.memory_space<vmem>>, vector<512x128xbf16>
    tpu.vector_store %arg4[%c0_4, %c0_5], %4 {strides = array<i32>} : memref<512x128xbf16, #tpu.memory_space<vmem>>, vector<512x128xbf16>,
    return
  }
  func.func @transform_0(%arg0: i32, %arg1: memref<3xi32, #tpu.memory_space<smem>>) -> (i32, i32) {
    %c0_i32 = arith.constant 0 : i32
    %c0_i32_0 = arith.constant 0 : i32
    return %arg0, %c0_i32 : i32, i32
  }
  func.func @transform_1(%arg0: i32, %arg1: memref<3xi32, #tpu.memory_space<smem>>) -> (i32, i32, i32) {
    %0 = arith.index_cast %arg0 : i32 to index
    %1 = memref.load %arg1[%0] : memref<3xi32, #tpu.memory_space<smem>>
    %c0_i32 = arith.constant 0 : i32
    %c0_i32_0 = arith.constant 0 : i32
    %c0_i32_1 = arith.constant 0 : i32
    return %1, %c0_i32, %c0_i32_0 : i32, i32, i32
  }
  func.func @transform_2(%arg0: i32, %arg1: memref<3xi32, #tpu.memory_space<smem>>) -> (i32, i32) {
    %c0_i32 = arith.constant 0 : i32
    %c0_i32_0 = arith.constant 0 : i32
    return %arg0, %c0_i32 : i32, i32
  }
}

</mosaic_0001>

<bundles_post_ra>
// kernel: tpu_custom_call.1
= control target key start
LH: loop header
LB: loop body
LE: loop exit
PB: predicated region body
PF: predicated region fallthrough
CT: control target
= control target key end

     0   :  { %s2113_s0 = inlined_call_operand.vmem [shape: s32[3], index: 0, kind: input, shape index: {}]   ;;  %s2114_s1 = inlined_call_operand.vmem [shape: bf16[1536,32], index: 1, kind: input, shape index: {}]   ;;  %s2115_s2 = inlined_call_operand.vmem [shape: bf16[3,32,128], index: 2, kind: input, shape index: {}]   ;;  %s2116_s3 = inlined_call_operand.hbm [shape: bf16[1536,128], index: 3, kind: output, shape index: {}]  }
   0x1   :  { %s8_s14 = sshll.u32 %s2113_s0, 4  ;;  %s9_s14 = int_to_ptr.vmem [resolvable:$true] %s8_s14 }
   0x2   :  { %s1797_s15 = scalar_lea.vmem %s9_s14, 16  ;;  %p1802_p1 = scmp.lt.s32.totalorder %s9_s14, %s9_s14 }
   0x3   :  { %p1798_p0 = scmp.ne.s32.totalorder %s9_s14, %s1797_s15  ;;  %p1803_p2 = scmp.lt.s32.totalorder %s1797_s15, %s1797_s15 }
   0x5   :  { %p1804_p3 = por %p1803_p2, %p1802_p1 }
   0x7   :  { %p1805_p4 = pnand %p1804_p3, %p1798_p0 }
   0x9   :  { %1808 = shalt.err (!%p1805_p4)  }
   0xa   :  { %s1875_s16 = smov [#allocation3]  }
   0xb   :  { %11 = dma.vmem_to_smem %s9_s14, 16, %s1875_s16, [#allocation2] }
   0xc   :  { %1853 = dma.done.wait [#allocation2], 16 }
   0xd   :  { %1854 = vsyncadd [#allocation2], 4294967280 }
   0xe   :  { %13 = sfence }
   0xf   :  { %14 = vsyncpa [#allocation5], 0 }
  0x10   :  { %16 = vsyncpa [#allocation5 + $0x1], 0  ;;  %s1902_s17 = smov 0   ;;  %s1904_s18 = smov 0  }
  0x11   :  { %s1906_s0 = smov 0   ;;  %s1908_s19 = smov 0  }
  0x12 LB: > { %s1923_s20 = sadd.s32 4294967295, %s1873_s19   ;;  %s1214_s21 = sadd.s32 4294967294, %s1873_s19   ;;  %s1873_s19 = sphi %s1908_s19, %s2122_s19   ;;  %s1869_s0 = sphi %s1906_s0, %s2121_s0   ;;  %s1865_s18 = sphi %s1904_s18, %s2120_s18   ;;  %s1861_s17 = sphi %s1902_s17, %s2119_s17  }
  0x13   : > { %s1927_s22 = sadd.s32 1, %s1873_s19   ;;  %s83_s23 = sadd.s32 1, %s1869_s0 }
  0x14   : > { %s80_s24 = ssub.s32 %s1873_s19, %s1927_s22  ;;  %p93_p5 = scmp.ne.s32.totalorder %s1869_s0, %s1865_s18 }
  0x15   : > { %p81_p6 = scmp.eq.s32.totalorder %s80_s24, 0  ;;  %p94_p7 = scmp.eq.s32.totalorder %s1923_s20, 2 }
  0x16   : > { %p99_p8 = scmp.ne.s32.totalorder %s1865_s18, %s1861_s17  ;;  %p100_p9 = scmp.eq.s32.totalorder %s1214_s21, 2 }
  0x17   : > { %s1938_s25 = scalar_select %p81_p6, %s1869_s0, %s83_s23  }
  0x18   : > { %p1940_p10 = por %p94_p7, %p93_p5  ;;  %p1944_p11 = por %p100_p9, %p99_p8 }
  0x19   : > { %p1217_p12 = scmp.ge.s32.totalorder %s1873_s19, 1  ;;  %p137_p13 = scmp.lt.s32.totalorder %s1873_s19, 4 }
  0x1b   : > { %p138_p0 = pnand %p1217_p12, %p137_p13 }
  0x1c   : > { %s171_s28 = sld [smem:[#allocation3 + %s1923_s20]] (!%p138_p0)  ;;  %s1219_s29 = sshll.u32 (!%p138_p0), %s1923_s20, 6  ;;  %vm420_vm0 = vcmask (!%p138_p0), 261120  }
  0x1d   : > { %141 = sbr.rel (%p138_p0) target bundleno = 338 (0x152), region = 28  ;;  %p166_p1 = scmp.lt.s32.totalorder (!%p138_p0), %s1219_s29, 191 }
  0x1e   : > { %s162_s11 = sand.u32 (!%p138_p0), 1, %s1865_s18   ;;  %s1423_s14 = sshll.u32 (!%p138_p0), %s1923_s20, 12 }
  0x1f   : > { %s1218_s12 = sshll.u32 (!%p138_p0), %s162_s11, 8  ;;  %s2062_s23 = scalar_lea.hbm (!%p138_p0), %s2116_s3, %s1423_s14 }
  0x20   : > { %s2027_s13 = scalar_lea.vmem (!%p138_p0), [#allocation4], %s1218_s12  ;;  %s2072_s20 = scalar_lea.sflag (!%p138_p0), [#allocation5], %s162_s11 }
  0x21   : > { %s1140_s15 = sshll.u32 (!%p138_p0), %s2027_s13, 4  ;;  %s2064_s15 = int_to_ptr.vmem [resolvable:$true] %s1140_s15 }
  0x22   : > { %p172_p2 = scmp.lt.s32.totalorder (!%p138_p0), %s171_s28, 2  ;;  %s1809_s24 = scalar_lea.vmem (!%p138_p0), %s2064_s15, 4096 }
  0x23   : > { %p1810_p3 = scmp.ne.s32.totalorder (!%p138_p0), %s2064_s15, %s1809_s24 }
  0x24   : > { %s2124_s29 = smov (!%p166_p1, %s1219_s29), 191  ;;  %s2126_s28 = smov (!%p172_p2, %s171_s28), 2 }
  0x25   : > { %s1220_s30 = sshll.u32 %s2124_s29, 2  ;;  %s1358_s7 = sshll.u32 %s2126_s28, 4 }
  0x26   : > { %s1955_s6 = scalar_lea.vmem %s2114_s1, %s1220_s30  ;;  %s176_s10 = scalar_lea.vmem %s2115_s2, %s1358_s7 }
  0x27   : > { %v1765_v0 = vld [vmem:[%s1955_s6] sm:$0xff]   ;;  %v1764_v3 = vld [vmem:[%s176_s10 + $0x8] sm:$0xff]   ;;  %v1769_v6 = vld [vmem:[%s1955_s6 + $0x10] sm:$0xff]   ;;  %p1811_p4 = pnand %p1810_p3, %p1940_p10  ;;  %s1876_s28 = smov [#allocation4]  }
  0x28   : > { %v1766_v1 = vld [vmem:[%s1955_s6 + $0x80] sm:$0xff]   ;;  %1653 = vmatprep.mubr.msk.bf16.mxu0 %vm420_vm0, %v1765_v0  ;;  %v1767_v4 = vld [vmem:[%s1955_s6 + $0x8] sm:$0xff]   ;;  %v1770_v7 = vld [vmem:[%s1955_s6 + $0x90] sm:$0xff]   ;;  %s1813_s29 = sshll.u32 %s1876_s28, 4  ;;  %s1814_s29 = int_to_ptr.vmem [resolvable:$false] %s1813_s29 }
  0x29   : > { %1685 = vmatprep.mubr.msk.bf16.mxu1 %vm420_vm0, %v1766_v1  ;;  %v1763_v2 = vld [vmem:[%s176_s10] sm:$0xff]   ;;  %v1768_v5 = vld [vmem:[%s1955_s6 + $0x88] sm:$0xff]   ;;  %v1771_v8 = vld [vmem:[%s1955_s6 + $0x18] sm:$0xff]   ;;  %p1812_p5 = pneg %p1811_p4  ;;  %s1815_s30 = scalar_lea.vmem %s1814_s29, 8192 }
  0x2a   : > { %1649 = vmatprep.subr.bf16.mxu0 %v1763_v2  ;;  %1717 = vmatprep.subr.bf16.mxu1 %v1763_v2  ;;  %v1772_v9 = vld [vmem:[%s1955_s6 + $0x98] sm:$0xff]   ;;  %v1773_v10 = vld [vmem:[%s1955_s6 + $0x20] sm:$0xff]   ;;  %v1775_v12 = vld [vmem:[%s1955_s6 + $0x28] sm:$0xff]   ;;  %p1816_p6 = scmp.lt.s32.totalorder %s2064_s15, %s1814_s29  ;;  %p1817_p7 = scmp.lt.s32.totalorder %s1815_s30, %s1809_s24 }
  0x2b   : > { %1650 = vmatpush3.bf16.msra.mxu0 %v1763_v2  ;;  %1719 = vmatpush3.bf16.msra.mxu1 %v1763_v2  ;;  %v1774_v11 = vld [vmem:[%s1955_s6 + $0xa0] sm:$0xff]   ;;  %v1776_v13 = vld [vmem:[%s1955_s6 + $0xa8] sm:$0xff]   ;;  %v1777_v14 = vld [vmem:[%s1955_s6 + $0x30] sm:$0xff]  }
  0x2c   : > { %1651 = vmatprep.subr.bf16.mxu0 %v1764_v3  ;;  %1718 = vmatprep.subr.bf16.mxu1 %v1764_v3  ;;  %v1778_v15 = vld [vmem:[%s1955_s6 + $0xb0] sm:$0xff]   ;;  %v1779_v16 = vld [vmem:[%s1955_s6 + $0x38] sm:$0xff]   ;;  %v1781_v18 = vld [vmem:[%s1955_s6 + $0x40] sm:$0xff]   ;;  %p1818_p8 = por %p1817_p7, %p1816_p6 }
  0x2d   : > { %v1780_v17 = vld [vmem:[%s1955_s6 + $0xb8] sm:$0xff]   ;;  %v1782_v19 = vld [vmem:[%s1955_s6 + $0xc0] sm:$0xff]   ;;  %v1783_v20 = vld [vmem:[%s1955_s6 + $0x48] sm:$0xff]  }
  0x2e   : > { %v1784_v21 = vld [vmem:[%s1955_s6 + $0xc8] sm:$0xff]   ;;  %v1785_v22 = vld [vmem:[%s1955_s6 + $0x50] sm:$0xff]   ;;  %v1787_v24 = vld [vmem:[%s1955_s6 + $0x58] sm:$0xff]   ;;  %p1819_p9 = pnand %p1818_p8, %p1812_p5 }
  0x2f   : > { %1652 = vmatpush3.bf16.msra.mxu0 %v1764_v3  ;;  %1720 = vmatpush3.bf16.msra.mxu1 %v1764_v3  ;;  %v1786_v23 = vld [vmem:[%s1955_s6 + $0xd0] sm:$0xff]   ;;  %v1788_v25 = vld [vmem:[%s1955_s6 + $0xd8] sm:$0xff]   ;;  %v1789_v26 = vld [vmem:[%s1955_s6 + $0x60] sm:$0xff]  }
  0x30   : > { %v1790_v27 = vld [vmem:[%s1955_s6 + $0xe0] sm:$0xff]   ;;  %v1791_v28 = vld [vmem:[%s1955_s6 + $0x68] sm:$0xff]   ;;  %v1793_v30 = vld [vmem:[%s1955_s6 + $0x70] sm:$0xff]  }
  0x31   : > { %v1792_v29 = vld [vmem:[%s1955_s6 + $0xe8] sm:$0xff]   ;;  %v1794_v31 = vld [vmem:[%s1955_s6 + $0xf0] sm:$0xff]   ;;  %v1795_v32 = vld [vmem:[%s1955_s6 + $0x78] sm:$0xff]  }
  0x32   : > { %1654 = vmatmul.mubr.msk.bf16.vlgmr.msra.gmra.mrb[0].mxu0 %vm420_vm0, %v1767_v4  ;;  %1686 = vmatmul.mubr.msk.bf16.vlgmr.msra.gmra.mrb[0].mxu1 %vm420_vm0, %v1768_v5  ;;  %v1796_v33 = vld [vmem:[%s1955_s6 + $0xf8] sm:$0xff]  }
  0x33   : > { %1657 = vmatprep.mubr.msk.bf16.mxu0 %vm420_vm0, %v1769_v6  ;;  %1689 = vmatprep.mubr.msk.bf16.mxu1 %vm420_vm0, %v1770_v7 }
  0x3a   : > { %1658 = vmatmul.mubr.msk.bf16.gmra.mrb[4].mxu0 %vm420_vm0, %v1771_v8  ;;  %1690 = vmatmul.mubr.msk.bf16.gmra.mrb[4].mxu1 %vm420_vm0, %v1772_v9 }
  0x3b   : > { %1661 = vmatprep.mubr.msk.bf16.mxu0 %vm420_vm0, %v1773_v10  ;;  %1693 = vmatprep.mubr.msk.bf16.mxu1 %vm420_vm0, %v1774_v11 }
  0x42   : > { %1662 = vmatmul.mubr.msk.bf16.gmra.mrb[8].mxu0 %vm420_vm0, %v1775_v12  ;;  %1694 = vmatmul.mubr.msk.bf16.gmra.mrb[8].mxu1 %vm420_vm0, %v1776_v13 }
  0x43   : > { %1665 = vmatprep.mubr.msk.bf16.mxu0 %vm420_vm0, %v1777_v14  ;;  %1697 = vmatprep.mubr.msk.bf16.mxu1 %vm420_vm0, %v1778_v15 }
  0x4a   : > { %1666 = vmatmul.mubr.msk.bf16.gmra.mrb[12].mxu0 %vm420_vm0, %v1779_v16  ;;  %1698 = vmatmul.mubr.msk.bf16.gmra.mrb[12].mxu1 %vm420_vm0, %v1780_v17 }
  0x4b   : > { %1669 = vmatprep.mubr.msk.bf16.mxu0 %vm420_vm0, %v1781_v18  ;;  %1701 = vmatprep.mubr.msk.bf16.mxu1 %vm420_vm0, %v1782_v19 }
  0x52   : > { %1670 = vmatmul.mubr.msk.bf16.gmra.mrb[16].mxu0 %vm420_vm0, %v1783_v20  ;;  %1702 = vmatmul.mubr.msk.bf16.gmra.mrb[16].mxu1 %vm420_vm0, %v1784_v21 }
  0x53   : > { %1673 = vmatprep.mubr.msk.bf16.mxu0 %vm420_vm0, %v1785_v22  ;;  %1705 = vmatprep.mubr.msk.bf16.mxu1 %vm420_vm0, %v1786_v23 }
  0x5a   : > { %1674 = vmatmul.mubr.msk.bf16.gmra.mrb[20].mxu0 %vm420_vm0, %v1787_v24  ;;  %1706 = vmatmul.mubr.msk.bf16.gmra.mrb[20].mxu1 %vm420_vm0, %v1788_v25 }
  0x5b   : > { %1677 = vmatprep.mubr.msk.bf16.mxu0 %vm420_vm0, %v1789_v26  ;;  %1709 = vmatprep.mubr.msk.bf16.mxu1 %vm420_vm0, %v1790_v27 }
  0x62   : > { %1678 = vmatmul.mubr.msk.bf16.gmra.mrb[24].mxu0 %vm420_vm0, %v1791_v28  ;;  %1710 = vmatmul.mubr.msk.bf16.gmra.mrb[24].mxu1 %vm420_vm0, %v1792_v29 }
  0x63   : > { %1681 = vmatprep.mubr.msk.bf16.mxu0 %vm420_vm0, %v1793_v30  ;;  %1713 = vmatprep.mubr.msk.bf16.mxu1 %vm420_vm0, %v1794_v31 }
  0x6a   : > { %1682 = vmatmul.mubr.msk.bf16.gmra.mrb[28].mxu0 %vm420_vm0, %v1795_v32  ;;  %1714 = vmatmul.mubr.msk.bf16.gmra.mrb[28].mxu1 %vm420_vm0, %v1796_v33 }
 0x105   : > { %v1655_v34 = vpop.f32.mrb[0].mxu0  ;;  %v1687_v35 = vpop.f32.mrb[0].mxu1 }
 0x106   : > { %v551_v36 = vpop.f32.mrb[1].mxu0  ;;  %v679_v37 = vpop.f32.mrb[1].mxu1 }
 0x107   : > { %v1656_v38 = vpop.f32.mrb[2].mxu0  ;;  %v1688_v39 = vpop.f32.mrb[2].mxu1 }
 0x108   : > { %v1432_v40 = vpack.c.bf16 %v1656_v38, %v1655_v34  ;;  %v1512_v41 = vpack.c.bf16 %v1688_v39, %v1687_v35  ;;  %v554_v42 = vpop.f32.mrb[3].mxu0  ;;  %v682_v43 = vpop.f32.mrb[3].mxu1 }
 0x109   : > { %v1427_v44 = vpack.c.bf16 %v554_v42, %v551_v36  ;;  %v1507_v45 = vpack.c.bf16 %v682_v43, %v679_v37 }
 0x10a   : > { %1584 = vst [vmem:[%s2027_s13 + $0x8] sm:$0xff] %v1432_v40   ;;  %1600 = vst [vmem:[%s2027_s13 + $0x88] sm:$0xff] %v1512_v41  }
 0x10b   : > { %1428 = vst [vmem:[%s2027_s13] sm:$0xff] %v1427_v44   ;;  %1599 = vst [vmem:[%s2027_s13 + $0x80] sm:$0xff] %v1507_v45  }
 0x10d   : > { %v1659_v46 = vpop.f32.mrb[4].mxu0  ;;  %v1691_v47 = vpop.f32.mrb[4].mxu1 }
 0x10e   : > { %v567_v48 = vpop.f32.mrb[5].mxu0  ;;  %v695_v49 = vpop.f32.mrb[5].mxu1 }
 0x10f   : > { %v1660_v50 = vpop.f32.mrb[6].mxu0  ;;  %v1692_v51 = vpop.f32.mrb[6].mxu1 }
 0x110   : > { %v1442_v52 = vpack.c.bf16 %v1660_v50, %v1659_v46  ;;  %v1522_v53 = vpack.c.bf16 %v1692_v51, %v1691_v47  ;;  %v570_v54 = vpop.f32.mrb[7].mxu0  ;;  %v698_v55 = vpop.f32.mrb[7].mxu1 }
 0x111   : > { %v1437_v56 = vpack.c.bf16 %v570_v54, %v567_v48  ;;  %v1517_v57 = vpack.c.bf16 %v698_v55, %v695_v49 }
 0x112   : > { %1586 = vst [vmem:[%s2027_s13 + $0x18] sm:$0xff] %v1442_v52   ;;  %1602 = vst [vmem:[%s2027_s13 + $0x98] sm:$0xff] %v1522_v53  }
 0x113   : > { %1585 = vst [vmem:[%s2027_s13 + $0x10] sm:$0xff] %v1437_v56   ;;  %1601 = vst [vmem:[%s2027_s13 + $0x90] sm:$0xff] %v1517_v57  }
 0x115   : > { %v1663_v58 = vpop.f32.mrb[8].mxu0  ;;  %v1695_v59 = vpop.f32.mrb[8].mxu1 }
 0x116   : > { %v583_v60 = vpop.f32.mrb[9].mxu0  ;;  %v711_v61 = vpop.f32.mrb[9].mxu1 }
 0x117   : > { %v1664_v62 = vpop.f32.mrb[10].mxu0  ;;  %v1696_v63 = vpop.f32.mrb[10].mxu1 }
 0x118   : > { %v1452_v0 = vpack.c.bf16 %v1664_v62, %v1663_v58  ;;  %v1532_v1 = vpack.c.bf16 %v1696_v63, %v1695_v59  ;;  %v586_v2 = vpop.f32.mrb[11].mxu0  ;;  %v714_v3 = vpop.f32.mrb[11].mxu1 }
 0x119   : > { %v1447_v4 = vpack.c.bf16 %v586_v2, %v583_v60  ;;  %v1527_v5 = vpack.c.bf16 %v714_v3, %v711_v61 }
 0x11a   : > { %1588 = vst [vmem:[%s2027_s13 + $0x28] sm:$0xff] %v1452_v0   ;;  %1604 = vst [vmem:[%s2027_s13 + $0xa8] sm:$0xff] %v1532_v1  }
 0x11b   : > { %1587 = vst [vmem:[%s2027_s13 + $0x20] sm:$0xff] %v1447_v4   ;;  %1603 = vst [vmem:[%s2027_s13 + $0xa0] sm:$0xff] %v1527_v5  }
 0x11d   : > { %v1667_v6 = vpop.f32.mrb[12].mxu0  ;;  %v1699_v7 = vpop.f32.mrb[12].mxu1 }
 0x11e   : > { %v599_v8 = vpop.f32.mrb[13].mxu0  ;;  %v727_v9 = vpop.f32.mrb[13].mxu1 }
 0x11f   : > { %v1668_v10 = vpop.f32.mrb[14].mxu0  ;;  %v1700_v11 = vpop.f32.mrb[14].mxu1 }
 0x120   : > { %v1462_v12 = vpack.c.bf16 %v1668_v10, %v1667_v6  ;;  %v1542_v13 = vpack.c.bf16 %v1700_v11, %v1699_v7  ;;  %v602_v14 = vpop.f32.mrb[15].mxu0  ;;  %v730_v15 = vpop.f32.mrb[15].mxu1 }
 0x121   : > { %v1457_v16 = vpack.c.bf16 %v602_v14, %v599_v8  ;;  %v1537_v17 = vpack.c.bf16 %v730_v15, %v727_v9 }
 0x122   : > { %1590 = vst [vmem:[%s2027_s13 + $0x38] sm:$0xff] %v1462_v12   ;;  %1606 = vst [vmem:[%s2027_s13 + $0xb8] sm:$0xff] %v1542_v13  }
 0x123   : > { %1589 = vst [vmem:[%s2027_s13 + $0x30] sm:$0xff] %v1457_v16   ;;  %1605 = vst [vmem:[%s2027_s13 + $0xb0] sm:$0xff] %v1537_v17  }
 0x125   : > { %v1671_v18 = vpop.f32.mrb[16].mxu0  ;;  %v1703_v19 = vpop.f32.mrb[16].mxu1 }
 0x126   : > { %v615_v20 = vpop.f32.mrb[17].mxu0  ;;  %v743_v21 = vpop.f32.mrb[17].mxu1 }
 0x127   : > { %v1672_v22 = vpop.f32.mrb[18].mxu0  ;;  %v1704_v23 = vpop.f32.mrb[18].mxu1 }
 0x128   : > { %v1472_v24 = vpack.c.bf16 %v1672_v22, %v1671_v18  ;;  %v1552_v25 = vpack.c.bf16 %v1704_v23, %v1703_v19  ;;  %v618_v26 = vpop.f32.mrb[19].mxu0  ;;  %v746_v27 = vpop.f32.mrb[19].mxu1 }
 0x129   : > { %v1467_v28 = vpack.c.bf16 %v618_v26, %v615_v20  ;;  %v1547_v29 = vpack.c.bf16 %v746_v27, %v743_v21 }
 0x12a   : > { %1592 = vst [vmem:[%s2027_s13 + $0x48] sm:$0xff] %v1472_v24   ;;  %1608 = vst [vmem:[%s2027_s13 + $0xc8] sm:$0xff] %v1552_v25  }
 0x12b   : > { %1591 = vst [vmem:[%s2027_s13 + $0x40] sm:$0xff] %v1467_v28   ;;  %1607 = vst [vmem:[%s2027_s13 + $0xc0] sm:$0xff] %v1547_v29  }
 0x12d   : > { %v1675_v30 = vpop.f32.mrb[20].mxu0  ;;  %v1707_v31 = vpop.f32.mrb[20].mxu1 }
 0x12e   : > { %v631_v32 = vpop.f32.mrb[21].mxu0  ;;  %v759_v33 = vpop.f32.mrb[21].mxu1 }
 0x12f   : > { %v1676_v34 = vpop.f32.mrb[22].mxu0  ;;  %v1708_v35 = vpop.f32.mrb[22].mxu1 }
 0x130   : > { %v1482_v36 = vpack.c.bf16 %v1676_v34, %v1675_v30  ;;  %v1562_v37 = vpack.c.bf16 %v1708_v35, %v1707_v31  ;;  %v634_v38 = vpop.f32.mrb[23].mxu0  ;;  %v762_v39 = vpop.f32.mrb[23].mxu1 }
 0x131   : > { %v1477_v40 = vpack.c.bf16 %v634_v38, %v631_v32  ;;  %v1557_v41 = vpack.c.bf16 %v762_v39, %v759_v33 }
 0x132   : > { %1594 = vst [vmem:[%s2027_s13 + $0x58] sm:$0xff] %v1482_v36   ;;  %1610 = vst [vmem:[%s2027_s13 + $0xd8] sm:$0xff] %v1562_v37  }
 0x133   : > { %1593 = vst [vmem:[%s2027_s13 + $0x50] sm:$0xff] %v1477_v40   ;;  %1609 = vst [vmem:[%s2027_s13 + $0xd0] sm:$0xff] %v1557_v41  }
 0x135   : > { %v1679_v42 = vpop.f32.mrb[24].mxu0  ;;  %v1711_v43 = vpop.f32.mrb[24].mxu1 }
 0x136   : > { %v647_v44 = vpop.f32.mrb[25].mxu0  ;;  %v775_v45 = vpop.f32.mrb[25].mxu1 }
 0x137   : > { %v1680_v46 = vpop.f32.mrb[26].mxu0  ;;  %v1712_v47 = vpop.f32.mrb[26].mxu1 }
 0x138   : > { %v1492_v48 = vpack.c.bf16 %v1680_v46, %v1679_v42  ;;  %v1572_v49 = vpack.c.bf16 %v1712_v47, %v1711_v43  ;;  %v650_v50 = vpop.f32.mrb[27].mxu0  ;;  %v778_v51 = vpop.f32.mrb[27].mxu1 }
 0x139   : > { %v1487_v52 = vpack.c.bf16 %v650_v50, %v647_v44  ;;  %v1567_v53 = vpack.c.bf16 %v778_v51, %v775_v45 }
 0x13a   : > { %1596 = vst [vmem:[%s2027_s13 + $0x68] sm:$0xff] %v1492_v48   ;;  %1612 = vst [vmem:[%s2027_s13 + $0xe8] sm:$0xff] %v1572_v49  }
 0x13b   : > { %1595 = vst [vmem:[%s2027_s13 + $0x60] sm:$0xff] %v1487_v52   ;;  %1611 = vst [vmem:[%s2027_s13 + $0xe0] sm:$0xff] %v1567_v53  }
 0x13d   : > { %v1683_v54 = vpop.f32.mrb[28].mxu0  ;;  %v1715_v55 = vpop.f32.mrb[28].mxu1 }
 0x13e   : > { %v663_v56 = vpop.f32.mrb[29].mxu0  ;;  %v791_v57 = vpop.f32.mrb[29].mxu1 }
 0x13f   : > { %v1684_v58 = vpop.f32.mrb[30].mxu0  ;;  %v1716_v59 = vpop.f32.mrb[30].mxu1 }
 0x140   : > { %v1502_v60 = vpack.c.bf16 %v1684_v58, %v1683_v54  ;;  %v1582_v61 = vpack.c.bf16 %v1716_v59, %v1715_v55  ;;  %v666_v62 = vpop.f32.mrb[31].mxu0  ;;  %v794_v63 = vpop.f32.mrb[31].mxu1 }
 0x141   : > { %v1497_v0 = vpack.c.bf16 %v666_v62, %v663_v56  ;;  %v1577_v1 = vpack.c.bf16 %v794_v63, %v791_v57 }
 0x142   : > { %1598 = vst [vmem:[%s2027_s13 + $0x78] sm:$0xff] %v1502_v60   ;;  %1614 = vst [vmem:[%s2027_s13 + $0xf8] sm:$0xff] %v1582_v61  }
 0x143   : > { %1597 = vst [vmem:[%s2027_s13 + $0x70] sm:$0xff] %v1497_v0   ;;  %1613 = vst [vmem:[%s2027_s13 + $0xf0] sm:$0xff] %v1577_v1  }
 0x144   : > { %1822 = shalt.err (!%p1819_p9)
}
 0x145   : > { %s1823_s4 = scalar_lea.hbm %s2062_s23, 4096  ;;  %s1827_s7 = scalar_lea.hbm %s2116_s3, 12288 }
 0x146   : > { %p1824_p12 = scmp.ne.s32.totalorder %s2062_s23, %s1823_s4  ;;  %p1828_p1 = scmp.lt.u32.totalorder %s2062_s23, %s2116_s3 }
 0x147   : > { %p1829_p2 = scmp.lt.u32.totalorder %s1827_s7, %s1823_s4  ;;  %p1831_p4 = scmp.lt.u32.totalorder %s1823_s4, %s2062_s23 }
 0x148   : > { %p1825_p13 = pnand %p1824_p12, %p1940_p10 }
 0x149   : > { %p1830_p3 = por %p1829_p2, %p1828_p1 }
 0x14a   : > { %p1826_p0 = pneg %p1825_p13 }
 0x14b   : > { %p1832_p5 = por %p1831_p4, %p1830_p3 }
 0x14d   : > { %p1833_p6 = pnand %p1832_p5, %p1826_p0 }
 0x14f   : > { %1836 = shalt.err (!%p1833_p6)
}
 0x150   : > { %s1877_s10 = smov 64   ;;  %s1878_s11 = smov 4  }
 0x151   : > { %1721 = dma.vmem_to_hbm [thread:$0]  (%p1940_p10), %s2064_s15, 4096, %s2062_s23, %s2072_s20, %s1877_s10, %s1877_s10, %s1878_s11  }
 0x152 PF: > { %p1727_p7 = scmp.ge.s32.totalorder %s1873_s19, 2  ;;  %s1155_s12 = sand.u32 1, %s1861_s17  }
 0x153   : > { %s1156_s13 = scalar_lea.sflag [#allocation5], %s1155_s12 }
 0x154   : > { %p1724_p8 = pnand %p1727_p7, %p1944_p11 }
 0x156   : > { %1856 = dma.done.wait (!%p1724_p8), %s1156_s13, 4096  }
 0x157   : > { %1858 = vsyncadd (!%p1724_p8), %s1156_s13, 4294963200  ;;  %p19_p9 = scmp.ge.s32.totalorder %s1927_s22, 5   ;;  %s2119_s17 = smov %s1865_s18 }
 0x158   : > { %s2120_s18 = smov %s1869_s0  ;;  %s2121_s0 = smov %s1938_s25 }
 0x159   : > { %s2122_s19 = smov %s1927_s22  ;;  %21 = sbr.rel (!%p19_p9) target bundleno = 18 (0x12), region = 66 }
 0x160   :  { %1161 = vsyncpa [#allocation5], 1 }
 0x161   :  { %1163 = vsyncpa [#allocation5 + $0x1], 1 }

</bundles_post_ra>
